<compile_context>
chip_gen: v7x
topology: tpu7x:2x2x1
jax: 0.10.0
libtpu: 0.0.40
codegen_flags: <defaults>
</compile_context>

<pallas_src>
import functools

import jax
import jax.numpy as jnp
import numpy as np
from jax.experimental import pallas as pl
from jax.experimental.pallas import tpu as pltpu


def _make_block1_kernel(dilation: int):
    """Pallas kernel body: one batch element, (C, L) channels-on-sublane layout."""

    def kernel(x_ref, bn1s_ref, bn1b_ref, w1_ref, b2_ref, w2_ref, b3_ref,
               w3_ref, o_ref):
        L = x_ref.shape[2]
        x = x_ref[0]                                            # (C, L) f32

        # bn1 + relu (elementwise, f32)
        h = jnp.maximum(x * bn1s_ref[...] + bn1b_ref[...], 0.0)

        # fused cv1 of all branches (+ folded bn2 scale) + bias + relu
        a = jnp.dot(w1_ref[...], h.astype(jnp.bfloat16),
                    preferred_element_type=jnp.float32)         # (Csum, L)
        a = jnp.maximum(a + b2_ref[...], 0.0)
        ab = a.astype(jnp.bfloat16)

        # fused dilated conv3 (block-diagonal taps, bn3 scale folded in):
        #   y[:, l] = m0[:, l-d] + m1[:, l] + m2[:, l+d]   (zero outside [0, L))
        m0 = jnp.dot(w2_ref[0], ab, preferred_element_type=jnp.float32)
        m1 = jnp.dot(w2_ref[1], ab, preferred_element_type=jnp.float32)
        m2 = jnp.dot(w2_ref[2], ab, preferred_element_type=jnp.float32)

        col = jax.lax.broadcasted_iota(jnp.int32, (1, L), 1)
        left = jnp.where(col >= dilation,
                         pltpu.roll(m0, shift=dilation, axis=1), 0.0)
        right = jnp.where(col < L - dilation,
                          pltpu.roll(m2, shift=L - dilation, axis=1), 0.0)

        # bn3 bias + relu
        y = jnp.maximum(left + m1 + right + b3_ref[...], 0.0)

        # fused cv3 of all branches (sum over branches is implicit) + residual
        out = jnp.dot(w3_ref[...], y.astype(jnp.bfloat16),
                      preferred_element_type=jnp.float32)       # (C, L)
        o_ref[0] = (x + out).astype(o_ref.dtype)

    return kernel


def _bn_affine(gamma, beta, mean, var, eps=1e-5):
    scale = gamma / jnp.sqrt(var + eps)
    bias = beta - mean * scale
    return scale, bias


def block1_forward(x_ncl, params, *, splits: int, dilation: int):
    """Pallas implementation of block1.forward.  x_ncl: (N, C, L) float32."""
    N, C, L = x_ncl.shape
    inter = C // splits
    Csum = splits * inter
    assert 0 < dilation < L, "dilation must be in (0, L) for the roll-based conv"

    # ---- glue: fold BN params into weights, build fused/block-diagonal weights ----
    bn1s, bn1b = _bn_affine(*params["bn1"])
    bn1s = bn1s.reshape(C, 1).astype(jnp.float32)
    bn1b = bn1b.reshape(C, 1).astype(jnp.float32)

    w1_rows, b2_rows, b3_rows, w3_cols = [], [], [], []
    w2_bd = jnp.zeros((3, Csum, Csum), jnp.float32)
    for i in range(splits):
        p = params["branches"][i]
        s2, b2 = _bn_affine(*p["bn2"])
        s3, b3 = _bn_affine(*p["bn3"])
        # cv1 weight (inter, C) with bn2 scale folded into output rows
        w1_rows.append(s2[:, None] * p["w1"][:, :, 0])
        b2_rows.append(b2)
        # cv2 taps: block-diagonal, bn3 scale folded into output rows
        lo, hi = i * inter, (i + 1) * inter
        for k in range(3):
            w2_bd = w2_bd.at[k, lo:hi, lo:hi].set(s3[:, None] * p["w2"][:, :, k])
        b3_rows.append(b3)
        # cv3 weight (C, inter) concatenated along input columns
        w3_cols.append(p["w3"][:, :, 0])

    w1cat = jnp.concatenate(w1_rows, axis=0).astype(jnp.bfloat16)   # (Csum, C)
    b2cat = jnp.concatenate(b2_rows).reshape(Csum, 1).astype(jnp.float32)
    w2bd = w2_bd.astype(jnp.bfloat16)                               # (3, Csum, Csum)
    b3cat = jnp.concatenate(b3_rows).reshape(Csum, 1).astype(jnp.float32)
    w3cat = jnp.concatenate(w3_cols, axis=1).astype(jnp.bfloat16)   # (C, Csum)

    def const_spec(shape):
        return pl.BlockSpec(shape, lambda n, _s=shape: (0,) * len(_s))

    kernel = _make_block1_kernel(dilation)

    flops = 2 * N * L * (Csum * C + 3 * Csum * Csum + C * Csum)
    bytes_accessed = int(
        2 * N * C * L * 4                                   # x in, out
        + (w1cat.size + w2bd.size + w3cat.size) * 2         # bf16 weights
        + (b2cat.size + b3cat.size + bn1s.size + bn1b.size) * 4)

    out = pl.pallas_call(
        kernel,
        out_shape=jax.ShapeDtypeStruct((N, C, L), x_ncl.dtype),
        grid_spec=pltpu.PrefetchScalarGridSpec(
            num_scalar_prefetch=0,
            grid=(N,),                                      # one batch element per step
            in_specs=[
                pl.BlockSpec((1, C, L), lambda n: (n, 0, 0)),   # x
                const_spec((C, 1)), const_spec((C, 1)),          # bn1 scale/bias
                const_spec((Csum, C)),                           # fused w1 (bn2-scaled)
                const_spec((Csum, 1)),                           # bn2 bias
                const_spec((3, Csum, Csum)),                     # block-diag w2 taps
                const_spec((Csum, 1)),                           # bn3 bias
                const_spec((C, Csum)),                           # fused w3
            ],
            out_specs=pl.BlockSpec((1, C, L), lambda n: (n, 0, 0)),
        ),
        compiler_params=pltpu.CompilerParams(
            dimension_semantics=("parallel",)),
        cost_estimate=pl.CostEstimate(flops=flops, transcendentals=0,
                                      bytes_accessed=bytes_accessed),
    )(x_ncl, bn1s, bn1b, w1cat, b2cat, w2bd, b3cat, w3cat)

    return out                                              # already (N, C, L)


# ------------------------- pure-JAX reference (for checking) -------------------------
def block1_reference(x_ncl, params, *, splits: int, dilation: int, eps=1e-5):
    def bn(x, gamma, beta, mean, var):
        return (gamma[None, :, None] * (x - mean[None, :, None])
                / jnp.sqrt(var[None, :, None] + eps) + beta[None, :, None])

    x0 = x_ncl                                            # res_on, no downsample
    h = jax.nn.relu(bn(x_ncl, *params["bn1"]))
    total = 0.0
    for i in range(splits):
        p = params["branches"][i]
        a = jnp.einsum("oc,ncl->nol", p["w1"][:, :, 0], h)
        a = jax.nn.relu(bn(a, *p["bn2"]))
        y = jax.lax.conv_general_dilated(
            a, p["w2"], window_strides=(1,), padding=[(dilation, dilation)],
            rhs_dilation=(dilation,), dimension_numbers=("NCH", "OIH", "NCH"))
        y = jax.nn.relu(bn(y, *p["bn3"]))
        total = total + jnp.einsum("oc,ncl->nol", p["w3"][:, :, 0], y)
    return total + x0


# ------------------------- deterministic parameter init -------------------------
def init_params(key, C, splits):
    inter = C // splits
    keys = jax.random.split(key, 1 + splits)

    def bn_params(k, ch):
        k1, k2, k3, k4 = jax.random.split(k, 4)
        gamma = jax.random.uniform(k1, (ch,), minval=0.5, maxval=1.5)
        beta = jax.random.normal(k2, (ch,)) * 0.1
        mean = jax.random.normal(k3, (ch,)) * 0.1
        var = jax.random.uniform(k4, (ch,), minval=0.5, maxval=1.5)
        return (gamma, beta, mean, var)

    params = {"bn1": bn_params(keys[0], C), "branches": []}
    for i in range(splits):
        kk = jax.random.split(keys[1 + i], 5)
        params["branches"].append({
            "w1": jax.random.normal(kk[0], (inter, C, 1)) * 0.2,     # conv1 weight (O,I,1)
            "bn2": bn_params(kk[1], inter),
            "w2": jax.random.normal(kk[2], (inter, inter, 3)) * 0.2, # conv3 weight (O,I,3)
            "bn3": bn_params(kk[3], inter),
            "w3": jax.random.normal(kk[4], (C, inter, 1)) * 0.2,     # conv1 weight (O,I,1)
        })
    return params


if __name__ == "__main__":
    # in_channels == out_channels == 16 (first=False, stride=1); L multiple of 128
    # so the kernel's (C, L) tiles get lane-dense, unmasked stores.
    N, C, L = 2, 16, 128
    SPLITS, DILATION = 2, 2

    key = jax.random.PRNGKey(0)
    kx, kp = jax.random.split(key)
    x = jax.random.normal(kx, (N, C, L), dtype=jnp.float32)   # PyTorch NCL input
    params = init_params(kp, C, SPLITS)

    out = block1_forward(x, params, splits=SPLITS, dilation=DILATION)
    out = jax.block_until_ready(out)

    ref = block1_reference(x, params, splits=SPLITS, dilation=DILATION)
    # bf16 matmul operands (f32 accumulation) -> compare against the f32
    # reference with a correspondingly relaxed tolerance.
    np.testing.assert_allclose(np.asarray(out), np.asarray(ref),
                               rtol=5e-2, atol=5e-2)

    print("KERNEL_OK")
</pallas_src>

<mosaic_0001>
module attributes {stable_mosaic.version = 11 : i64} {
  func.func @kernel(%arg0: i32, %arg1: memref<1x16x128xf32, #tpu.memory_space<vmem>>, %arg2: memref<16x1xf32, #tpu.memory_space<vmem>>, %arg3: memref<16x1xf32, #tpu.memory_space<vmem>>, %arg4: memref<16x16xbf16, #tpu.memory_space<vmem>>, %arg5: memref<16x1xf32, #tpu.memory_space<vmem>>, %arg6: memref<3x16x16xbf16, #tpu.memory_space<vmem>>, %arg7: memref<16x1xf32, #tpu.memory_space<vmem>>, %arg8: memref<16x16xbf16, #tpu.memory_space<vmem>>, %arg9: memref<1x16x128xf32, #tpu.memory_space<vmem>>) attributes {dimension_semantics = [#tpu.dimension_semantics<parallel>], iteration_bounds = array<i64: 2>, scalar_prefetch = 0 : i64, scratch_operands = 0 : i64, tpu.core_type = #tpu.core_type<tc>, window_params = [{transform_indices = @transform_0, window_bounds = array<i64: 1, 16, 128>}, {pipeline_mode = #tpu.pipeline_mode<synchronous>, transform_indices = @transform_1, window_bounds = array<i64: 16, 1>}, {pipeline_mode = #tpu.pipeline_mode<synchronous>, transform_indices = @transform_2, window_bounds = array<i64: 16, 1>}, {pipeline_mode = #tpu.pipeline_mode<synchronous>, transform_indices = @transform_3, window_bounds = array<i64: 16, 16>}, {pipeline_mode = #tpu.pipeline_mode<synchronous>, transform_indices = @transform_4, window_bounds = array<i64: 16, 1>}, {pipeline_mode = #tpu.pipeline_mode<synchronous>, transform_indices = @transform_5, window_bounds = array<i64: 3, 16, 16>}, {pipeline_mode = #tpu.pipeline_mode<synchronous>, transform_indices = @transform_6, window_bounds = array<i64: 16, 1>}, {pipeline_mode = #tpu.pipeline_mode<synchronous>, transform_indices = @transform_7, window_bounds = array<i64: 16, 16>}, {transform_indices = @transform_8, window_bounds = array<i64: 1, 16, 128>}]} {
    %c0 = arith.constant 0 : index
    %c0_0 = arith.constant 0 : index
    %c0_1 = arith.constant 0 : index
    %0 = vector.load %arg1[%c0, %c0_0, %c0_1] : memref<1x16x128xf32, #tpu.memory_space<vmem>>, vector<1x16x128xf32>
    %1 = vector.shape_cast %0 : vector<1x16x128xf32> to vector<16x128xf32>
    %c0_2 = arith.constant 0 : index
    %c0_3 = arith.constant 0 : index
    %2 = vector.load %arg2[%c0_2, %c0_3] : memref<16x1xf32, #tpu.memory_space<vmem>>, vector<16x1xf32>
    %3 = vector.broadcast %2 : vector<16x1xf32> to vector<16x128xf32>
    %4 = arith.mulf %1, %3 : vector<16x128xf32>
    %c0_4 = arith.constant 0 : index
    %c0_5 = arith.constant 0 : index
    %5 = vector.load %arg3[%c0_4, %c0_5] : memref<16x1xf32, #tpu.memory_space<vmem>>, vector<16x1xf32>
    %6 = vector.broadcast %5 : vector<16x1xf32> to vector<16x128xf32>
    %7 = arith.addf %4, %6 : vector<16x128xf32>
    %cst = arith.constant 0.000000e+00 : f32
    %8 = vector.broadcast %cst : f32 to vector<16x128xf32>
    %9 = arith.maximumf %7, %8 : vector<16x128xf32>
    %c0_6 = arith.constant 0 : index
    %c0_7 = arith.constant 0 : index
    %10 = vector.load %arg4[%c0_6, %c0_7] : memref<16x16xbf16, #tpu.memory_space<vmem>>, vector<16x16xbf16>
    %11 = arith.truncf %9 : vector<16x128xf32> to vector<16x128xbf16>
    %cst_8 = arith.constant dense<0.000000e+00> : vector<16x128xf32>
    %12 = tpu.matmul %10, %11, %cst_8 {dimension_numbers = #tpu.dot_dimension_numbers<[1], [0], [0], [1], [0, 0, 1, 1], [], []>} : vector<16x16xbf16>, vector<16x128xbf16>, vector<16x128xf32> -> vector<16x128xf32>
    %c0_9 = arith.constant 0 : index
    %c0_10 = arith.constant 0 : index
    %13 = vector.load %arg5[%c0_9, %c0_10] : memref<16x1xf32, #tpu.memory_space<vmem>>, vector<16x1xf32>
    %14 = vector.broadcast %13 : vector<16x1xf32> to vector<16x128xf32>
    %15 = arith.addf %12, %14 : vector<16x128xf32>
    %cst_11 = arith.constant 0.000000e+00 : f32
    %16 = vector.broadcast %cst_11 : f32 to vector<16x128xf32>
    %17 = arith.maximumf %15, %16 : vector<16x128xf32>
    %18 = arith.truncf %17 : vector<16x128xf32> to vector<16x128xbf16>
    %c0_12 = arith.constant 0 : index
    %c0_13 = arith.constant 0 : index
    %c0_14 = arith.constant 0 : index
    %19 = vector.load %arg6[%c0_12, %c0_13, %c0_14] : memref<3x16x16xbf16, #tpu.memory_space<vmem>>, vector<1x16x16xbf16>
    %20 = vector.shape_cast %19 : vector<1x16x16xbf16> to vector<16x16xbf16>
    %cst_15 = arith.constant dense<0.000000e+00> : vector<16x128xf32>
    %21 = tpu.matmul %20, %18, %cst_15 {dimension_numbers = #tpu.dot_dimension_numbers<[1], [0], [0], [1], [0, 0, 1, 1], [], []>} : vector<16x16xbf16>, vector<16x128xbf16>, vector<16x128xf32> -> vector<16x128xf32>
    %c1 = arith.constant 1 : index
    %c0_16 = arith.constant 0 : index
    %c0_17 = arith.constant 0 : index
    %22 = vector.load %arg6[%c1, %c0_16, %c0_17] : memref<3x16x16xbf16, #tpu.memory_space<vmem>>, vector<1x16x16xbf16>
    %23 = vector.shape_cast %22 : vector<1x16x16xbf16> to vector<16x16xbf16>
    %cst_18 = arith.constant dense<0.000000e+00> : vector<16x128xf32>
    %24 = tpu.matmul %23, %18, %cst_18 {dimension_numbers = #tpu.dot_dimension_numbers<[1], [0], [0], [1], [0, 0, 1, 1], [], []>} : vector<16x16xbf16>, vector<16x128xbf16>, vector<16x128xf32> -> vector<16x128xf32>
    %c2 = arith.constant 2 : index
    %c0_19 = arith.constant 0 : index
    %c0_20 = arith.constant 0 : index
    %25 = vector.load %arg6[%c2, %c0_19, %c0_20] : memref<3x16x16xbf16, #tpu.memory_space<vmem>>, vector<1x16x16xbf16>
    %26 = vector.shape_cast %25 : vector<1x16x16xbf16> to vector<16x16xbf16>
    %cst_21 = arith.constant dense<0.000000e+00> : vector<16x128xf32>
    %27 = tpu.matmul %26, %18, %cst_21 {dimension_numbers = #tpu.dot_dimension_numbers<[1], [0], [0], [1], [0, 0, 1, 1], [], []>} : vector<16x16xbf16>, vector<16x128xbf16>, vector<16x128xf32> -> vector<16x128xf32>
    %28 = tpu.iota {dimensions = array<i32: 1>} : vector<1x128xi32>
    %c2_i32 = arith.constant 2 : i32
    %29 = vector.broadcast %c2_i32 : i32 to vector<1x128xi32>
    %30 = arith.cmpi sge, %28, %29 : vector<1x128xi32>
    %c2_i32_22 = arith.constant 2 : i32
    %31 = tpu.dynamic_rotate %21 by %c2_i32_22 dim 1 : vector<16x128xf32>, i32 -> vector<16x128xf32>
    %cst_23 = arith.constant 0.000000e+00 : f32
    %32 = vector.shape_cast %30 : vector<1x128xi1> to vector<1x128xi1>
    %33 = vector.broadcast %32 : vector<1x128xi1> to vector<16x128xi1>
    %34 = vector.broadcast %cst_23 : f32 to vector<16x128xf32>
    %35 = arith.select %33, %31, %34 : vector<16x128xi1>, vector<16x128xf32>
    %c126_i32 = arith.constant 126 : i32
    %36 = vector.broadcast %c126_i32 : i32 to vector<1x128xi32>
    %37 = arith.cmpi slt, %28, %36 : vector<1x128xi32>
    %c126_i32_24 = arith.constant 126 : i32
    %38 = tpu.dynamic_rotate %27 by %c126_i32_24 dim 1 : vector<16x128xf32>, i32 -> vector<16x128xf32>
    %cst_25 = arith.constant 0.000000e+00 : f32
    %39 = vector.shape_cast %37 : vector<1x128xi1> to vector<1x128xi1>
    %40 = vector.broadcast %39 : vector<1x128xi1> to vector<16x128xi1>
    %41 = vector.broadcast %cst_25 : f32 to vector<16x128xf32>
    %42 = arith.select %40, %38, %41 : vector<16x128xi1>, vector<16x128xf32>
    %43 = arith.addf %35, %24 : vector<16x128xf32>
    %44 = arith.addf %43, %42 : vector<16x128xf32>
    %c0_26 = arith.constant 0 : index
    %c0_27 = arith.constant 0 : index
    %45 = vector.load %arg7[%c0_26, %c0_27] : memref<16x1xf32, #tpu.memory_space<vmem>>, vector<16x1xf32>
    %46 = vector.broadcast %45 : vector<16x1xf32> to vector<16x128xf32>
    %47 = arith.addf %44, %46 : vector<16x128xf32>
    %cst_28 = arith.constant 0.000000e+00 : f32
    %48 = vector.broadcast %cst_28 : f32 to vector<16x128xf32>
    %49 = arith.maximumf %47, %48 : vector<16x128xf32>
    %c0_29 = arith.constant 0 : index
    %c0_30 = arith.constant 0 : index
    %50 = vector.load %arg8[%c0_29, %c0_30] : memref<16x16xbf16, #tpu.memory_space<vmem>>, vector<16x16xbf16>
    %51 = arith.truncf %49 : vector<16x128xf32> to vector<16x128xbf16>
    %cst_31 = arith.constant dense<0.000000e+00> : vector<16x128xf32>
    %52 = tpu.matmul %50, %51, %cst_31 {dimension_numbers = #tpu.dot_dimension_numbers<[1], [0], [0], [1], [0, 0, 1, 1], [], []>} : vector<16x16xbf16>, vector<16x128xbf16>, vector<16x128xf32> -> vector<16x128xf32>
    %53 = arith.addf %1, %52 : vector<16x128xf32>
    %c0_32 = arith.constant 0 : index
    %c0_33 = arith.constant 0 : index
    %c0_34 = arith.constant 0 : index
    %54 = vector.load %arg9[%c0_32, %c0_33, %c0_34] : memref<1x16x128xf32, #tpu.memory_space<vmem>>, vector<1x16x128xf32>
    %55 = vector.shape_cast %54 : vector<1x16x128xf32> to vector<16x128xf32>
    %56 = vector.shape_cast %53 : vector<16x128xf32> to vector<1x16x128xf32>
    tpu.vector_store %arg9[%c0_32, %c0_33, %c0_34], %56 {strides = array<i32>} : memref<1x16x128xf32, #tpu.memory_space<vmem>>, vector<1x16x128xf32>,
    return
  }
  func.func @transform_0(%arg0: i32) -> (i32, i32, i32) {
    %c0_i32 = arith.constant 0 : i32
    %c0_i32_0 = arith.constant 0 : i32
    %c0_i32_1 = arith.constant 0 : i32
    return %arg0, %c0_i32, %c0_i32_0 : i32, i32, i32
  }
  func.func @transform_1(%arg0: i32) -> (i32, i32) {
    %c0_i32 = arith.constant 0 : i32
    %c0_i32_0 = arith.constant 0 : i32
    %c0_i32_1 = arith.constant 0 : i32
    return %c0_i32, %c0_i32_0 : i32, i32
  }
  func.func @transform_2(%arg0: i32) -> (i32, i32) {
    %c0_i32 = arith.constant 0 : i32
    %c0_i32_0 = arith.constant 0 : i32
    %c0_i32_1 = arith.constant 0 : i32
    return %c0_i32, %c0_i32_0 : i32, i32
  }
  func.func @transform_3(%arg0: i32) -> (i32, i32) {
    %c0_i32 = arith.constant 0 : i32
    %c0_i32_0 = arith.constant 0 : i32
    %c0_i32_1 = arith.constant 0 : i32
    return %c0_i32, %c0_i32_0 : i32, i32
  }
  func.func @transform_4(%arg0: i32) -> (i32, i32) {
    %c0_i32 = arith.constant 0 : i32
    %c0_i32_0 = arith.constant 0 : i32
    %c0_i32_1 = arith.constant 0 : i32
    return %c0_i32, %c0_i32_0 : i32, i32
  }
  func.func @transform_5(%arg0: i32) -> (i32, i32, i32) {
    %c0_i32 = arith.constant 0 : i32
    %c0_i32_0 = arith.constant 0 : i32
    %c0_i32_1 = arith.constant 0 : i32
    %c0_i32_2 = arith.constant 0 : i32
    return %c0_i32, %c0_i32_0, %c0_i32_1 : i32, i32, i32
  }
  func.func @transform_6(%arg0: i32) -> (i32, i32) {
    %c0_i32 = arith.constant 0 : i32
    %c0_i32_0 = arith.constant 0 : i32
    %c0_i32_1 = arith.constant 0 : i32
    return %c0_i32, %c0_i32_0 : i32, i32
  }
  func.func @transform_7(%arg0: i32) -> (i32, i32) {
    %c0_i32 = arith.constant 0 : i32
    %c0_i32_0 = arith.constant 0 : i32
    %c0_i32_1 = arith.constant 0 : i32
    return %c0_i32, %c0_i32_0 : i32, i32
  }
  func.func @transform_8(%arg0: i32) -> (i32, i32, i32) {
    %c0_i32 = arith.constant 0 : i32
    %c0_i32_0 = arith.constant 0 : i32
    %c0_i32_1 = arith.constant 0 : i32
    return %arg0, %c0_i32, %c0_i32_0 : i32, i32, i32
  }
}

</mosaic_0001>

<bundles_post_ra>
// kernel: tpu_custom_call.1
= control target key start
LH: loop header
LB: loop body
LE: loop exit
PB: predicated region body
PF: predicated region fallthrough
CT: control target
= control target key end

     0   :  { %13 = vsyncpa [#allocation3], 0  ;;  %s1130_s0 = inlined_call_operand.vmem [shape: f32[2,16,128], index: 0, kind: input, shape index: {}]   ;;  %s1131_s1 = inlined_call_operand.vmem [shape: f32[16,1], index: 1, kind: input, shape index: {}]   ;;  %s1132_s2 = inlined_call_operand.vmem [shape: f32[16,1], index: 2, kind: input, shape index: {}]   ;;  %s1133_s3 = inlined_call_operand.vmem [shape: bf16[16,16], index: 3, kind: input, shape index: {}]   ;;  %s1134_s4 = inlined_call_operand.vmem [shape: f32[16,1], index: 4, kind: input, shape index: {}]   ;;  %s1135_s5 = inlined_call_operand.vmem [shape: bf16[3,16,16], index: 5, kind: input, shape index: {}]   ;;  %s1136_s6 = inlined_call_operand.vmem [shape: f32[16,1], index: 6, kind: input, shape index: {}]   ;;  %s1137_s7 = inlined_call_operand.vmem [shape: bf16[16,16], index: 7, kind: input, shape index: {}]   ;;  %s1138_s8 = inlined_call_operand.hbm [shape: f32[2,16,128], index: 8, kind: output, shape index: {}]  }
   0x1   :  { %15 = vsyncpa [#allocation3 + $0x1], 0  ;;  %s970_s27 = smov 0   ;;  %s972_s28 = smov 0  }
   0x2   :  { %s974_s29 = smov 0   ;;  %s976_s30 = smov 0  }
   0x3 LB: > { %s991_s9 = sadd.s32 4294967295, %s915_s30   ;;  %s732_s10 = sadd.s32 4294967294, %s915_s30   ;;  %s915_s30 = sphi %s976_s30, %s1144_s30   ;;  %s911_s29 = sphi %s974_s29, %s1143_s29   ;;  %s907_s28 = sphi %s972_s28, %s1142_s28   ;;  %s903_s27 = sphi %s970_s27, %s1141_s27  }
   0x4   : > { %s995_s11 = sadd.s32 1, %s915_s30   ;;  %s201_s12 = sadd.s32 1, %s911_s29 }
   0x5   : > { %s198_s13 = ssub.s32 %s915_s30, %s995_s11  ;;  %p211_p0 = scmp.ne.s32.totalorder %s911_s29, %s907_s28 }
   0x6   : > { %p199_p1 = scmp.eq.s32.totalorder %s198_s13, 0  ;;  %p212_p2 = scmp.eq.s32.totalorder %s991_s9, 1 }
   0x7   : > { %p217_p3 = scmp.ne.s32.totalorder %s907_s28, %s903_s27  ;;  %p218_p4 = scmp.eq.s32.totalorder %s732_s10, 1 }
   0x8   : > { %s1006_s14 = scalar_select %p199_p1, %s911_s29, %s201_s12  }
   0x9   : > { %p1008_p5 = por %p212_p2, %p211_p0  ;;  %p1012_p6 = por %p218_p4, %p217_p3 }
   0xa   : > { %p735_p7 = scmp.ge.s32.totalorder %s915_s30, 1  ;;  %p265_p8 = scmp.lt.s32.totalorder %s915_s30, 3 }
   0xc   : > { %p266_p9 = pnand %p735_p7, %p265_p8 }
   0xd   : > { %v321_v0 = vld [vmem:[%s1132_s2] sm:$0xff] (!%p266_p9)  ;;  %v917_v2 = vmov (!%p266_p9), 0   ;;  %v322_v3 = vld [vmem:[%s1132_s2 + $0x8] sm:$0xff] (!%p266_p9)  ;;  %v918_v9 = vmov (!%p266_p9), 0.0   ;;  %vm919_vm0 = vmmov (!%p266_p9), 0   ;;  %p299_p10 = scmp.lt.s32.totalorder (!%p266_p9), %s991_s9, 1  ;;  %v560_v50 = vlaneseq (!%p266_p9) }
   0xe   : > { %269 = sbr.rel (%p266_p9) target bundleno = 961 (0x3c1), region = 52  ;;  %v307_v1 = vld [vmem:[%s1131_s1] sm:$0xff] (!%p266_p9)  ;;  %847 = vset.pattern.permute.xlu1 (!%p266_p9), %v917_v2  ;;  %846 = vset.pattern.permute.xlu0 (!%p266_p9), %v917_v2  ;;  %v308_v4 = vld [vmem:[%s1131_s1 + $0x8] sm:$0xff] (!%p266_p9)  ;;  %vm357_vm1 = vcmask (!%p266_p9), 130048   ;;  %v850_v37 = vld [vmem:[%s1135_s5 + $0x10] sm:$0xff] (!%p266_p9)   ;;  %s759_s12 = sshll.u32 (!%p266_p9), %s991_s9, 8 }
   0xf   : > { %325 = vperm.xlu1 (!%p266_p9), %847, %v321_v0   ;;  %311 = vperm.xlu0 (!%p266_p9), %846, %v307_v1   ;;  %v341_v5 = vld [vmem:[%s1134_s4 + $0x8] sm:$0xff] (!%p266_p9)  ;;  %v340_v6 = vld [vmem:[%s1134_s4] sm:$0xff] (!%p266_p9)  ;;  %v561_v52 = vand.u32 (!%p266_p9), 127, %v560_v50  ;;  %s1086_s18 = scalar_lea.hbm (!%p266_p9), %s1138_s8, %s759_s12 }
  0x10   : > { %v585_v7 = vld [vmem:[%s1136_s6 + $0x8] sm:$0xff] (!%p266_p9)  ;;  %v584_v8 = vld [vmem:[%s1136_s6] sm:$0xff] (!%p266_p9)  ;;  %770 = vmatprep.subr.bf16.mxu0 (!%p266_p9), %v918_v9  ;;  %776 = vmatprep.subr.bf16.mxu1 (!%p266_p9), %v918_v9 }
  0x11   : > { %772 = vmatprep.mubr.msk.bf16.mxu0 (!%p266_p9), %vm919_vm0, %v918_v9  ;;  %778 = vmatprep.mubr.msk.bf16.mxu1 (!%p266_p9), %vm919_vm0, %v918_v9  ;;  %v848_v23 = vld [vmem:[%s1133_s3] sm:$0xff] (!%p266_p9)   ;;  %v851_v36 = vld [vmem:[%s1135_s5 + $0x8] sm:$0xff] (!%p266_p9)   ;;  %vm562_vm2 = vcmp.ge.s32.totalorder (!%p266_p9), %v561_v52, 2  ;;  %vm571_vm3 = vcmp.lt.s32.totalorder (!%p266_p9), %v561_v52, 126 }
  0x12   : > { %v849_v35 = vld [vmem:[%s1135_s5] sm:$0xff] (!%p266_p9)  }
  0x13   : > { %330 = vperm.xlu1 (!%p266_p9), %847, %v322_v3   ;;  %316 = vperm.xlu0 (!%p266_p9), %846, %v308_v4  }
  0x15   : > { %s300_s20 = scalar_select %p299_p10, %s991_s9, 1 }
  0x17   : > { %349 = vperm.xlu1 %847, %v341_v5   ;;  %344 = vperm.xlu0 %846, %v340_v6   ;;  %s758_s21 = sshll.u32 %s300_s20, 4  ;;  %s920_s20 = smov 2  }
  0x18   : > { %s303_s24 = scalar_lea.vmem %s1130_s0, %s758_s21  ;;  %s921_s21 = smov 126  }
  0x19   : > { %v1049_v10 = vld [vmem:[%s303_s24] sm:$0xff]  ;;  %v1052_v14 = vld [vmem:[%s303_s24 + $0x8] sm:$0xff]  ;;  %s296_s24 = sand.u32 1, %s907_s28  }
  0x1a   : > { %s736_s25 = sshll.u32 %s296_s24, 4  ;;  %s1089_s9 = scalar_lea.sflag [#allocation3], %s296_s24 }
  0x1b   : > { %593 = vperm.xlu1 %847, %v585_v7   ;;  %588 = vperm.xlu0 %846, %v584_v8   ;;  %v852_v7 = vld [vmem:[%s1137_s7] sm:$0xff]   ;;  %s298_s26 = scalar_lea.vmem [#allocation2], %s736_s25 }
  0x1c   : > { %s670_s10 = sshll.u32 %s298_s26, 4  ;;  %s1081_s10 = int_to_ptr.vmem [resolvable:$true] %s670_s10 }
  0x1d   : > { %s853_s19 = scalar_lea.vmem %s1081_s10, 256 }
  0x1e   : > { %p854_p11 = scmp.ne.s32.totalorder %s1081_s10, %s853_s19 }
  0x20   : > { %p855_p12 = pnand %p854_p11, %p1008_p5 }
  0x22   : > { %p856_p13 = pneg %p855_p12 }
  0x8e   : > { %v326_v11 = vpop.permute.xlu1 %325  ;;  %v312_v12 = vpop.permute.xlu0 %311 }
  0x8f   : > { %v319_v13 = vmul.f32 %v312_v12, %v1049_v10 }
  0x91   : > { %v333_v16 = vadd.f32 %v326_v11, %v319_v13 }
  0x92   : > { %v317_v15 = vpop.permute.xlu0 %316  ;;  %v331_v18 = vpop.permute.xlu1 %330 }
  0x93   : > { %v320_v17 = vmul.f32 %v317_v15, %v1052_v14  ;;  %v335_v20 = vmax.f32 %v333_v16, 0.0 }
  0x95   : > { %v334_v19 = vadd.f32 %v331_v18, %v320_v17 }
  0x96   : > { %v345_v24 = vpop.permute.xlu0 %344  ;;  %v350_v28 = vpop.permute.xlu1 %349 }
  0x97   : > { %v336_v21 = vmax.f32 %v334_v19, 0.0 }
  0x99   : > { %v339_v22 = vpack.c.bf16 %v336_v21, %v335_v20 }
  0x9a   : > { %v589_v51 = vpop.permute.xlu0 %588  ;;  %v594_v53 = vpop.permute.xlu1 %593 }
  0x9b   : > { %771 = vmatpush3.bf16.msra.mxu0 %v339_v22 }
  0x9c   : > { %782 = vmatprep.subr.bf16.mxu0 %v918_v9 }
  0x9e   : > { %773 = vmatmul.mubr.msk.bf16.vlgmr.msra.gmra.mrb[0].mxu0 %vm357_vm1, %v848_v23 }
  0x9f   : > { %784 = vmatprep.mubr.msk.bf16.mxu0 %vm919_vm0, %v918_v9 }
 0x171   : > { %v395_v25 = vpop.f32.mrb[0].mxu0 }
 0x172   : > { %v396_v26 = vadd.f32 %v395_v25, %v345_v24  ;;  %v774_v27 = vpop.f32.mrb[1].mxu0 }
 0x173   : > { %v398_v29 = vpop.f32.mrb[2].mxu0 }
 0x174   : > { %v399_v30 = vadd.f32 %v398_v29, %v350_v28  ;;  %v775_v31 = vpop.f32.mrb[3].mxu0  ;;  %v402_v32 = vmax.f32 %v396_v26, 0.0 }
 0x176   : > { %v403_v33 = vmax.f32 %v399_v30, 0.0 }
 0x178   : > { %v404_v34 = vpack.c.bf16 %v403_v33, %v402_v32 }
 0x17a   : > { %777 = vmatpush3.bf16.msra.mxu1 %v404_v34  ;;  %783 = vmatpush3.bf16.msra.mxu0 %v404_v34 }
 0x17b   : > { %788 = vmatprep.subr.bf16.mxu1 %v918_v9  ;;  %794 = vmatprep.subr.bf16.mxu0 %v918_v9 }
 0x17d   : > { %779 = vmatmul.mubr.msk.bf16.vlgmr.msra.gmra.mrb[0].mxu1 %vm357_vm1, %v849_v35  ;;  %785 = vmatmul.mubr.msk.bf16.vlgmr.msra.gmra.mrb[4].mxu0 %vm357_vm1, %v851_v36 }
 0x17e   : > { %789 = vmatpush3.bf16.msra.mxu1 %v404_v34  ;;  %790 = vmatprep.mubr.msk.bf16.mxu1 %vm919_vm0, %v918_v9 }
 0x17f   : > { %796 = vmatprep.mubr.msk.bf16.mxu0 %vm919_vm0, %v918_v9 }
 0x185   : > { %791 = vmatmul.mubr.msk.bf16.vlgmr.msra.gmra.mrb[4].mxu1 %vm357_vm1, %v850_v37 }
 0x250   : > { %v449_v38 = vpop.f32.mrb[0].mxu1  ;;  %v501_v39 = vpop.f32.mrb[4].mxu0 }
 0x251   : > { %563 = vrot.lane.b32.xlu0 %v449_v38, %s920_s20  ;;  %v780_v40 = vpop.f32.mrb[1].mxu1  ;;  %v786_v41 = vpop.f32.mrb[5].mxu0 }
 0x252   : > { %v452_v42 = vpop.f32.mrb[2].mxu1  ;;  %v504_v43 = vpop.f32.mrb[6].mxu0 }
 0x253   : > { %565 = vrot.lane.b32.xlu1 %v452_v42, %s920_s20  ;;  %v781_v44 = vpop.f32.mrb[3].mxu1  ;;  %v787_v45 = vpop.f32.mrb[7].mxu0  ;;  %s922_s20 = smov [#allocation2]  }
 0x258   : > { %v553_v46 = vpop.f32.mrb[4].mxu1 }
 0x259   : > { %572 = vrot.lane.b32.xlu0 %v553_v46, %s921_s21  ;;  %v792_v47 = vpop.f32.mrb[5].mxu1 }
 0x25a   : > { %v556_v48 = vpop.f32.mrb[6].mxu1 }
 0x25b   : > { %574 = vrot.lane.b32.xlu1 %v556_v48, %s921_s21  ;;  %v793_v49 = vpop.f32.mrb[7].mxu1  ;;  %s857_s21 = sshll.u32 %s922_s20, 4  ;;  %s858_s21 = int_to_ptr.vmem [resolvable:$false] %s857_s21 }
 0x25c   : > { %s859_s22 = scalar_lea.vmem %s858_s21, 512  ;;  %p860_p0 = scmp.lt.s32.totalorder %s1081_s10, %s858_s21 }
 0x25d   : > { %p861_p1 = scmp.lt.s32.totalorder %s859_s22, %s853_s19 }
 0x25f   : > { %p862_p2 = por %p861_p1, %p860_p0 }
 0x261   : > { %p863_p3 = pnand %p862_p2, %p856_p13 }
 0x2c3   : > { %v564_v54 = vpop.permute.xlu0 %563 }
 0x2c4   : > { %v569_v56 = vsel %vm562_vm2, %v564_v54, 0.0 }
 0x2c5   : > { %v566_v55 = vpop.permute.xlu1 %565  ;;  %v580_v58 = vadd.f32 %v569_v56, %v501_v39 }
 0x2c6   : > { %v570_v57 = vsel %vm562_vm2, %v566_v55, 0.0 }
 0x2c7   : > { %v581_v61 = vadd.f32 %v570_v57, %v504_v43 }
 0x2cb   : > { %v573_v59 = vpop.permute.xlu0 %572 }
 0x2cc   : > { %v578_v60 = vsel %vm571_vm3, %v573_v59, 0.0 }
 0x2cd   : > { %v582_v62 = vadd.f32 %v580_v58, %v578_v60  ;;  %v575_v63 = vpop.permute.xlu1 %574 }
 0x2ce   : > { %v579_v0 = vsel %vm571_vm3, %v575_v63, 0.0 }
 0x2cf   : > { %v596_v1 = vadd.f32 %v589_v51, %v582_v62  ;;  %v583_v2 = vadd.f32 %v581_v61, %v579_v0 }
 0x2d1   : > { %v597_v3 = vadd.f32 %v594_v53, %v583_v2  ;;  %v598_v4 = vmax.f32 %v596_v1, 0.0 }
 0x2d3   : > { %v599_v5 = vmax.f32 %v597_v3, 0.0 }
 0x2d5   : > { %v602_v6 = vpack.c.bf16 %v599_v5, %v598_v4 }
 0x2d7   : > { %795 = vmatpush3.bf16.msra.mxu0 %v602_v6 }
 0x2da   : > { %797 = vmatmul.mubr.msk.bf16.vlgmr.msra.gmra.mrb[8].mxu0 %vm357_vm1, %v852_v7 }
 0x3ad   : > { %v645_v8 = vpop.f32.mrb[8].mxu0 }
 0x3ae   : > { %v652_v9 = vadd.f32 %v645_v8, %v1049_v10  ;;  %v798_v11 = vpop.f32.mrb[9].mxu0 }
 0x3af   : > { %v648_v12 = vpop.f32.mrb[10].mxu0 }
 0x3b0   : > { %654 = vst [vmem:[%s298_s26] sm:$0xff] %v652_v9  ;;  %v653_v13 = vadd.f32 %v648_v12, %v1052_v14  ;;  %v799_v15 = vpop.f32.mrb[11].mxu0 }
 0x3b2   : > { %655 = vst [vmem:[%s298_s26 + $0x8] sm:$0xff] %v653_v13 }
 0x3b3   : > { %866 = shalt.err (!%p863_p3)
}
 0x3b4   : > { %s867_s23 = scalar_lea.hbm %s1086_s18, 256  ;;  %s871_s26 = scalar_lea.hbm %s1138_s8, 512 }
 0x3b5   : > { %p868_p4 = scmp.ne.s32.totalorder %s1086_s18, %s867_s23  ;;  %p872_p9 = scmp.lt.u32.totalorder %s1086_s18, %s1138_s8 }
 0x3b6   : > { %p873_p10 = scmp.lt.u32.totalorder %s871_s26, %s867_s23  ;;  %p875_p12 = scmp.lt.u32.totalorder %s867_s23, %s1086_s18 }
 0x3b7   : > { %p869_p7 = pnand %p868_p4, %p1008_p5 }
 0x3b8   : > { %p874_p11 = por %p873_p10, %p872_p9 }
 0x3b9   : > { %p870_p8 = pneg %p869_p7 }
 0x3ba   : > { %p876_p13 = por %p875_p12, %p874_p11 }
 0x3bc   : > { %p877_p0 = pnand %p876_p13, %p870_p8 }
 0x3be   : > { %880 = shalt.err (!%p877_p0)
}
 0x3bf   : > { %s923_s17 = smov 128   ;;  %s924_s19 = smov 8  }
 0x3c0   : > { %800 = dma.vmem_to_hbm [thread:$0]  (%p1008_p5), %s1081_s10, 256, %s1086_s18, %s1089_s9, %s923_s17, %s923_s17, %s924_s19  }
 0x3c1 PF: > { %p806_p1 = scmp.ge.s32.totalorder %s915_s30, 2  ;;  %s685_s20 = sand.u32 1, %s903_s27  }
 0x3c2   : > { %s686_s21 = scalar_lea.sflag [#allocation3], %s685_s20 }
 0x3c3   : > { %p803_p2 = pnand %p806_p1, %p1012_p6 }
 0x3c5   : > { %898 = dma.done.wait (!%p803_p2), %s686_s21, 256  }
 0x3c6   : > { %900 = vsyncadd (!%p803_p2), %s686_s21, 4294967040  ;;  %p18_p3 = scmp.ge.s32.totalorder %s995_s11, 4   ;;  %s1141_s27 = smov %s907_s28 }
 0x3c7   : > { %s1142_s28 = smov %s911_s29  ;;  %s1143_s29 = smov %s1006_s14 }
 0x3c8   : > { %s1144_s30 = smov %s995_s11  ;;  %20 = sbr.rel (!%p18_p3) target bundleno = 3 (0x3), region = 89 }
 0x3cf   :  { %691 = vsyncpa [#allocation3], 1 }
 0x3d0   :  { %693 = vsyncpa [#allocation3 + $0x1], 1 }

</bundles_post_ra>
